<compile_context>
chip_gen: v6e
topology: v6e:2x2x1
jax: 0.10.0
libtpu: 0.0.40
codegen_flags: <defaults>
</compile_context>

<pallas_src>
import jax
import jax.numpy as jnp
import numpy as np
from jax.experimental import pallas as pl
from jax.experimental.pallas import tpu as pltpu

# ---- problem sizes (small, consistent with the module) ----
B, N, C = 2, 8, 32
NUM_HEADS = 4
HEAD_DIM = C // NUM_HEADS
HIDDEN = C // 4                      # fc1: dim -> dim // 4
SCALE = HEAD_DIM ** -0.5
EPS = 1e-5

BH = B * NUM_HEADS                   # 8  (one row per (batch, head))
BN = B * N                           # 16 (one row per (batch, token))

# power-of-two shifts so in-kernel index math uses shift/and, not vector idiv
LOG2_HEADS = NUM_HEADS.bit_length() - 1      # 2
LOG2_N = N.bit_length() - 1                  # 3
LOG2_HEAD_DIM = HEAD_DIM.bit_length() - 1    # 3
assert NUM_HEADS == 1 << LOG2_HEADS and N == 1 << LOG2_N and HEAD_DIM == 1 << LOG2_HEAD_DIM


def _layernorm(z, w, b):
    mu = jnp.mean(z, axis=-1, keepdims=True)
    var = jnp.mean((z - mu) ** 2, axis=-1, keepdims=True)
    return (z - mu) * jax.lax.rsqrt(var + EPS) * w + b


def _gelu_exact(z):
    # exact GELU (matches nn.GELU default, erf based)
    return 0.5 * z * (1.0 + jax.lax.erf(z / jnp.sqrt(jnp.float32(2.0))))


def cross_attn_block_kernel(x_ref, wqkv_ref, wpf_ref, wtail_ref, o_ref):
    f32 = jnp.float32
    x = x_ref[...].astype(f32)                                  # (B*N, C)

    # ---- unpack the small packed parameter buffers ----
    wt = wtail_ref[...]                                         # (2*HIDDEN, C)
    fc2_w = wt[0:HIDDEN, :]                                     # (HIDDEN, C)
    ln1_w = wt[HIDDEN + 0:HIDDEN + 1, :]
    ln1_b = wt[HIDDEN + 1:HIDDEN + 2, :]
    ln2_w = wt[HIDDEN + 2:HIDDEN + 3, :]
    ln2_b = wt[HIDDEN + 3:HIDDEN + 4, :]
    proj_b = wt[HIDDEN + 4:HIDDEN + 5, :]
    fc1_b = wt[HIDDEN + 5:HIDDEN + 6, 0:HIDDEN]                 # (1, HIDDEN)
    fc2_b = wt[HIDDEN + 6:HIDDEN + 7, :]

    wpf = wpf_ref[...]                                          # (C, C + HIDDEN)
    proj_w = wpf[:, 0:C]
    fc1_w = wpf[:, C:C + HIDDEN]

    # ---- cross-attention on norm1(x): query is token 0 of each batch ----
    h1 = _layernorm(x, ln1_w, ln1_b)                            # (B*N, C)
    qkv = jnp.dot(h1, wqkv_ref[...],
                  preferred_element_type=f32)                   # (B*N, 3C), one MXU push
    q_all = qkv[:, 0:C]            # q of every token (only token-0 rows used)
    k = qkv[:, C:2 * C]
    v = qkv[:, 2 * C:3 * C]

    one, zero = jnp.float32(1.0), jnp.float32(0.0)

    # row id g = b*NUM_HEADS + h ; col id t = b*N + n
    g = jax.lax.broadcasted_iota(jnp.int32, (BH, BN), 0)
    t = jax.lax.broadcasted_iota(jnp.int32, (BH, BN), 1)
    g_batch = jnp.right_shift(g, LOG2_HEADS)                    # g // NUM_HEADS
    t_batch = jnp.right_shift(t, LOG2_N)                        # t // N

    # gather each batch's token-0 query row, replicated per head (matmul gather)
    qsel = jnp.where(t == g_batch * N, one, zero)               # (BH, BN)
    q_rows = jnp.dot(qsel, q_all, preferred_element_type=f32)   # (BH, C)

    gh = jax.lax.broadcasted_iota(jnp.int32, (BH, C), 0)
    ch = jax.lax.broadcasted_iota(jnp.int32, (BH, C), 1)
    head_mask = (jnp.right_shift(ch, LOG2_HEAD_DIM) ==
                 jnp.bitwise_and(gh, NUM_HEADS - 1))            # (BH, C)
    q_mat = jnp.where(head_mask, q_rows, zero)                  # zero other heads' lanes

    # all heads & batches in one score matmul (scale pre-folded into wq on host)
    s = jax.lax.dot_general(q_mat, k, (((1,), (1,)), ((), ())),
                            preferred_element_type=f32)         # (BH, BN)
    s = jnp.where(g_batch == t_batch, s, jnp.float32(-1e30))    # mask cross-batch cols
    s = s - jnp.max(s, axis=-1, keepdims=True)
    p = jnp.exp(s)
    p = p / jnp.sum(p, axis=-1, keepdims=True)                  # softmax over tokens

    o_heads = jnp.dot(p, v, preferred_element_type=f32)         # (BH, C)
    o_heads = jnp.where(head_mask, o_heads, zero)               # keep own head's lanes

    # sum head contributions and broadcast to every token row of its batch
    tb = jax.lax.broadcasted_iota(jnp.int32, (BN, BH), 0)
    gb = jax.lax.broadcasted_iota(jnp.int32, (BN, BH), 1)
    tok_sel = jnp.where(jnp.right_shift(tb, LOG2_N) ==
                        jnp.right_shift(gb, LOG2_HEADS), one, zero)   # (BN, BH)
    attn = jnp.dot(tok_sel, o_heads, preferred_element_type=f32)      # (BN, C)
    attn = jnp.dot(attn, proj_w, preferred_element_type=f32) + proj_b

    x = x + attn          # residual; attn rows are identical within a batch

    # ---- MLP branch on norm2(x) ----
    h2 = _layernorm(x, ln2_w, ln2_b)
    m = jnp.dot(h2, fc1_w, preferred_element_type=f32) + fc1_b        # (B*N, HIDDEN)
    m = _gelu_exact(m)
    m = jnp.dot(m, fc2_w, preferred_element_type=f32) + fc2_b         # (B*N, C)

    o_ref[...] = (x + m).astype(o_ref.dtype)


# ---- host-side parameter packing (done once; fuses QKV, folds scale, packs vectors) ----
def pack_params(p):
    w_qkv = jnp.concatenate(
        [p["wq"] * jnp.float32(SCALE), p["wk"], p["wv"]], axis=1)          # (C, 3C)
    w_pf = jnp.concatenate([p["proj_w"], p["fc1_w"]], axis=1)              # (C, C+HIDDEN)
    fc1_b_pad = jnp.concatenate(
        [p["fc1_b"], jnp.zeros((1, C - HIDDEN), jnp.float32)], axis=1)     # (1, C)
    vec_rows = jnp.concatenate(
        [p["ln1_w"], p["ln1_b"], p["ln2_w"], p["ln2_b"],
         p["proj_b"], fc1_b_pad, p["fc2_b"],
         jnp.zeros((1, C), jnp.float32)], axis=0)                          # (HIDDEN, C)
    w_tail = jnp.concatenate([p["fc2_w"], vec_rows], axis=0)               # (2*HIDDEN, C)
    return w_qkv, w_pf, w_tail


def cross_attention_block(x, params):
    w_qkv, w_pf, w_tail = pack_params(params)
    x2 = x.reshape(BN, C)                       # free HBM reshape in the wrapper

    out = pl.pallas_call(
        cross_attn_block_kernel,
        out_shape=jax.ShapeDtypeStruct((BN, C), x.dtype),
        grid=(1,),                              # single invocation: all batches fused
        in_specs=[
            pl.BlockSpec((BN, C), lambda i: (0, 0)),
            pl.BlockSpec((C, 3 * C), lambda i: (0, 0)),
            pl.BlockSpec((C, C + HIDDEN), lambda i: (0, 0)),
            pl.BlockSpec((2 * HIDDEN, C), lambda i: (0, 0)),
        ],
        out_specs=pl.BlockSpec((BN, C), lambda i: (0, 0)),
        compiler_params=pltpu.CompilerParams(dimension_semantics=("arbitrary",)),
    )(x2, w_qkv, w_pf, w_tail)
    return out.reshape(B, N, C)


# ---- deterministic synthetic parameters (weights stored as (in, out)) ----
def init_params(key):
    ks = jax.random.split(key, 13)
    rnd = lambda k, shape, s: s * jax.random.normal(k, shape, jnp.float32)
    return dict(
        ln1_w=1.0 + rnd(ks[0], (1, C), 0.05),
        ln1_b=rnd(ks[1], (1, C), 0.05),
        wq=rnd(ks[2], (C, C), 0.1),          # qkv_bias=False
        wk=rnd(ks[3], (C, C), 0.1),
        wv=rnd(ks[4], (C, C), 0.1),
        proj_w=rnd(ks[5], (C, C), 0.1),
        proj_b=rnd(ks[6], (1, C), 0.05),
        ln2_w=1.0 + rnd(ks[7], (1, C), 0.05),
        ln2_b=rnd(ks[8], (1, C), 0.05),
        fc1_w=rnd(ks[9], (C, HIDDEN), 0.1),
        fc1_b=rnd(ks[10], (1, HIDDEN), 0.05),
        fc2_w=rnd(ks[11], (HIDDEN, C), 0.1),
        fc2_b=rnd(ks[12], (1, C), 0.05),
    )


# ---- pure-JAX reference (mirrors the PyTorch forward exactly) ----
def reference(x, p):
    def ln(z, w, b):
        mu = z.mean(-1, keepdims=True)
        var = ((z - mu) ** 2).mean(-1, keepdims=True)
        return (z - mu) / jnp.sqrt(var + EPS) * w + b

    h = ln(x, p["ln1_w"], p["ln1_b"])
    q = h[:, 0:1] @ p["wq"]
    k = h @ p["wk"]
    v = h @ p["wv"]
    qh = q.reshape(B, 1, NUM_HEADS, HEAD_DIM).transpose(0, 2, 1, 3)
    kh = k.reshape(B, N, NUM_HEADS, HEAD_DIM).transpose(0, 2, 1, 3)
    vh = v.reshape(B, N, NUM_HEADS, HEAD_DIM).transpose(0, 2, 1, 3)
    attn = (qh @ kh.transpose(0, 1, 3, 2)) * SCALE
    attn = jax.nn.softmax(attn, axis=-1)
    out = (attn @ vh).transpose(0, 2, 1, 3).reshape(B, 1, C)
    out = out @ p["proj_w"] + p["proj_b"]
    x = x + out                                   # drop_path = identity
    h2 = ln(x, p["ln2_w"], p["ln2_b"])
    m = h2 @ p["fc1_w"] + p["fc1_b"]
    m = jax.nn.gelu(m, approximate=False)
    m = m @ p["fc2_w"] + p["fc2_b"]               # dropout = identity
    return x + m


if __name__ == "__main__":
    key = jax.random.PRNGKey(0)
    kx, kp = jax.random.split(key)
    x = jax.random.normal(kx, (B, N, C), jnp.float32)
    params = init_params(kp)

    out = cross_attention_block(x, params)
    out = jax.block_until_ready(out)

    ref = reference(x, params)
    np.testing.assert_allclose(np.asarray(out), np.asarray(ref), atol=1e-4, rtol=1e-4)
    print("KERNEL_OK")
</pallas_src>

<mosaic_0001>
module attributes {stable_mosaic.version = 11 : i64} {
  func.func @cross_attn_block_kernel(%arg0: i32, %arg1: memref<16x32xf32, #tpu.memory_space<vmem>>, %arg2: memref<32x96xf32, #tpu.memory_space<vmem>>, %arg3: memref<32x40xf32, #tpu.memory_space<vmem>>, %arg4: memref<16x32xf32, #tpu.memory_space<vmem>>, %arg5: memref<16x32xf32, #tpu.memory_space<vmem>>) attributes {dimension_semantics = [#tpu.dimension_semantics<arbitrary>], iteration_bounds = array<i64: 1>, scalar_prefetch = 0 : i64, scratch_operands = 0 : i64, tpu.core_type = #tpu.core_type<tc>, window_params = [{pipeline_mode = #tpu.pipeline_mode<synchronous>, transform_indices = @transform_0, window_bounds = array<i64: 16, 32>}, {pipeline_mode = #tpu.pipeline_mode<synchronous>, transform_indices = @transform_1, window_bounds = array<i64: 32, 96>}, {pipeline_mode = #tpu.pipeline_mode<synchronous>, transform_indices = @transform_2, window_bounds = array<i64: 32, 40>}, {pipeline_mode = #tpu.pipeline_mode<synchronous>, transform_indices = @transform_3, window_bounds = array<i64: 16, 32>}, {pipeline_mode = #tpu.pipeline_mode<synchronous>, transform_indices = @transform_4, window_bounds = array<i64: 16, 32>}]} {
    %c0 = arith.constant 0 : index
    %c0_0 = arith.constant 0 : index
    %0 = vector.load %arg1[%c0, %c0_0] : memref<16x32xf32, #tpu.memory_space<vmem>>, vector<16x32xf32>
    %c0_1 = arith.constant 0 : index
    %c0_2 = arith.constant 0 : index
    %1 = vector.load %arg4[%c0_1, %c0_2] : memref<16x32xf32, #tpu.memory_space<vmem>>, vector<16x32xf32>
    %2 = vector.extract_strided_slice %1 {offsets = [0, 0], sizes = [8, 32], strides = [1, 1]} : vector<16x32xf32> to vector<8x32xf32>
    %3 = vector.extract_strided_slice %1 {offsets = [8, 0], sizes = [1, 32], strides = [1, 1]} : vector<16x32xf32> to vector<1x32xf32>
    %4 = vector.extract_strided_slice %1 {offsets = [9, 0], sizes = [1, 32], strides = [1, 1]} : vector<16x32xf32> to vector<1x32xf32>
    %5 = vector.extract_strided_slice %1 {offsets = [10, 0], sizes = [1, 32], strides = [1, 1]} : vector<16x32xf32> to vector<1x32xf32>
    %6 = vector.extract_strided_slice %1 {offsets = [11, 0], sizes = [1, 32], strides = [1, 1]} : vector<16x32xf32> to vector<1x32xf32>
    %7 = vector.extract_strided_slice %1 {offsets = [12, 0], sizes = [1, 32], strides = [1, 1]} : vector<16x32xf32> to vector<1x32xf32>
    %8 = vector.extract_strided_slice %1 {offsets = [13, 0], sizes = [1, 8], strides = [1, 1]} : vector<16x32xf32> to vector<1x8xf32>
    %9 = vector.extract_strided_slice %1 {offsets = [14, 0], sizes = [1, 32], strides = [1, 1]} : vector<16x32xf32> to vector<1x32xf32>
    %c0_3 = arith.constant 0 : index
    %c0_4 = arith.constant 0 : index
    %10 = vector.load %arg3[%c0_3, %c0_4] : memref<32x40xf32, #tpu.memory_space<vmem>>, vector<32x40xf32>
    %11 = vector.extract_strided_slice %10 {offsets = [0, 0], sizes = [32, 32], strides = [1, 1]} : vector<32x40xf32> to vector<32x32xf32>
    %12 = vector.extract_strided_slice %10 {offsets = [0, 32], sizes = [32, 8], strides = [1, 1]} : vector<32x40xf32> to vector<32x8xf32>
    %cst = arith.constant dense<0.000000e+00> : vector<16xf32>
    %13 = vector.multi_reduction <add>, %0, %cst [1] : vector<16x32xf32> to vector<16xf32>
    %14 = vector.shape_cast %13 : vector<16xf32> to vector<16x1xf32>
    %cst_5 = arith.constant 3.200000e+01 : f32
    %15 = vector.broadcast %cst_5 : f32 to vector<16x1xf32>
    %16 = arith.divf %14, %15 : vector<16x1xf32>
    %17 = vector.broadcast %16 : vector<16x1xf32> to vector<16x32xf32>
    %18 = arith.subf %0, %17 : vector<16x32xf32>
    %19 = arith.mulf %18, %18 : vector<16x32xf32>
    %cst_6 = arith.constant dense<0.000000e+00> : vector<16xf32>
    %20 = vector.multi_reduction <add>, %19, %cst_6 [1] : vector<16x32xf32> to vector<16xf32>
    %21 = vector.shape_cast %20 : vector<16xf32> to vector<16x1xf32>
    %cst_7 = arith.constant 3.200000e+01 : f32
    %22 = vector.broadcast %cst_7 : f32 to vector<16x1xf32>
    %23 = arith.divf %21, %22 : vector<16x1xf32>
    %24 = vector.broadcast %16 : vector<16x1xf32> to vector<16x32xf32>
    %25 = arith.subf %0, %24 : vector<16x32xf32>
    %cst_8 = arith.constant 9.99999974E-6 : f32
    %26 = vector.broadcast %cst_8 : f32 to vector<16x1xf32>
    %27 = arith.addf %23, %26 : vector<16x1xf32>
    %28 = math.rsqrt %27 : vector<16x1xf32>
    %29 = vector.broadcast %28 : vector<16x1xf32> to vector<16x32xf32>
    %30 = arith.mulf %25, %29 : vector<16x32xf32>
    %31 = vector.broadcast %3 : vector<1x32xf32> to vector<16x32xf32>
    %32 = arith.mulf %30, %31 : vector<16x32xf32>
    %33 = vector.broadcast %4 : vector<1x32xf32> to vector<16x32xf32>
    %34 = arith.addf %32, %33 : vector<16x32xf32>
    %c0_9 = arith.constant 0 : index
    %c0_10 = arith.constant 0 : index
    %35 = vector.load %arg2[%c0_9, %c0_10] : memref<32x96xf32, #tpu.memory_space<vmem>>, vector<32x96xf32>
    %cst_11 = arith.constant dense<0.000000e+00> : vector<16x96xf32>
    %36 = tpu.matmul %34, %35, %cst_11 {dimension_numbers = #tpu.dot_dimension_numbers<[1], [0], [0], [1], [0, 0, 1, 1], [], []>} : vector<16x32xf32>, vector<32x96xf32>, vector<16x96xf32> -> vector<16x96xf32>
    %37 = vector.extract_strided_slice %36 {offsets = [0, 0], sizes = [16, 32], strides = [1, 1]} : vector<16x96xf32> to vector<16x32xf32>
    %38 = vector.extract_strided_slice %36 {offsets = [0, 32], sizes = [16, 32], strides = [1, 1]} : vector<16x96xf32> to vector<16x32xf32>
    %39 = vector.extract_strided_slice %36 {offsets = [0, 64], sizes = [16, 32], strides = [1, 1]} : vector<16x96xf32> to vector<16x32xf32>
    %40 = tpu.iota {dimensions = array<i32: 0>} : vector<8x16xi32>
    %41 = tpu.iota {dimensions = array<i32: 1>} : vector<8x16xi32>
    %c2_i32 = arith.constant 2 : i32
    %42 = vector.broadcast %c2_i32 : i32 to vector<8x16xi32>
    %43 = arith.shrsi %40, %42 : vector<8x16xi32>
    %c3_i32 = arith.constant 3 : i32
    %44 = vector.broadcast %c3_i32 : i32 to vector<8x16xi32>
    %45 = arith.shrsi %41, %44 : vector<8x16xi32>
    %c8_i32 = arith.constant 8 : i32
    %46 = vector.broadcast %c8_i32 : i32 to vector<8x16xi32>
    %47 = arith.muli %43, %46 : vector<8x16xi32>
    %48 = arith.cmpi eq, %41, %47 : vector<8x16xi32>
    %cst_12 = arith.constant 1.000000e+00 : f32
    %cst_13 = arith.constant 0.000000e+00 : f32
    %49 = vector.broadcast %cst_12 : f32 to vector<8x16xf32>
    %50 = vector.broadcast %cst_13 : f32 to vector<8x16xf32>
    %51 = arith.select %48, %49, %50 : vector<8x16xi1>, vector<8x16xf32>
    %cst_14 = arith.constant dense<0.000000e+00> : vector<8x32xf32>
    %52 = tpu.matmul %51, %37, %cst_14 {dimension_numbers = #tpu.dot_dimension_numbers<[1], [0], [0], [1], [0, 0, 1, 1], [], []>} : vector<8x16xf32>, vector<16x32xf32>, vector<8x32xf32> -> vector<8x32xf32>
    %53 = tpu.iota {dimensions = array<i32: 0>} : vector<8x32xi32>
    %54 = tpu.iota {dimensions = array<i32: 1>} : vector<8x32xi32>
    %c3_i32_15 = arith.constant 3 : i32
    %55 = vector.broadcast %c3_i32_15 : i32 to vector<8x32xi32>
    %56 = arith.shrsi %54, %55 : vector<8x32xi32>
    %c3_i32_16 = arith.constant 3 : i32
    %57 = vector.broadcast %c3_i32_16 : i32 to vector<8x32xi32>
    %58 = arith.andi %53, %57 : vector<8x32xi32>
    %59 = arith.cmpi eq, %56, %58 : vector<8x32xi32>
    %cst_17 = arith.constant 0.000000e+00 : f32
    %60 = vector.broadcast %cst_17 : f32 to vector<8x32xf32>
    %61 = arith.select %59, %52, %60 : vector<8x32xi1>, vector<8x32xf32>
    %cst_18 = arith.constant dense<0.000000e+00> : vector<8x16xf32>
    %62 = tpu.matmul %61, %38, %cst_18 {dimension_numbers = #tpu.dot_dimension_numbers<[1], [1], [0], [0], [0, 0, 1, 0], [], []>} : vector<8x32xf32>, vector<16x32xf32>, vector<8x16xf32> -> vector<8x16xf32>
    %63 = arith.cmpi eq, %43, %45 : vector<8x16xi32>
    %cst_19 = arith.constant -1.000000e+30 : f32
    %64 = vector.broadcast %cst_19 : f32 to vector<8x16xf32>
    %65 = arith.select %63, %62, %64 : vector<8x16xi1>, vector<8x16xf32>
    %cst_20 = arith.constant dense<0xFF800000> : vector<8xf32>
    %66 = vector.multi_reduction <maximumf>, %65, %cst_20 [1] : vector<8x16xf32> to vector<8xf32>
    %67 = vector.shape_cast %66 : vector<8xf32> to vector<8x1xf32>
    %68 = vector.broadcast %67 : vector<8x1xf32> to vector<8x16xf32>
    %69 = arith.subf %65, %68 : vector<8x16xf32>
    %70 = math.exp %69 : vector<8x16xf32>
    %cst_21 = arith.constant dense<0.000000e+00> : vector<8xf32>
    %71 = vector.multi_reduction <add>, %70, %cst_21 [1] : vector<8x16xf32> to vector<8xf32>
    %72 = vector.shape_cast %71 : vector<8xf32> to vector<8x1xf32>
    %73 = vector.broadcast %72 : vector<8x1xf32> to vector<8x16xf32>
    %74 = arith.divf %70, %73 : vector<8x16xf32>
    %cst_22 = arith.constant dense<0.000000e+00> : vector<8x32xf32>
    %75 = tpu.matmul %74, %39, %cst_22 {dimension_numbers = #tpu.dot_dimension_numbers<[1], [0], [0], [1], [0, 0, 1, 1], [], []>} : vector<8x16xf32>, vector<16x32xf32>, vector<8x32xf32> -> vector<8x32xf32>
    %cst_23 = arith.constant 0.000000e+00 : f32
    %76 = vector.broadcast %cst_23 : f32 to vector<8x32xf32>
    %77 = arith.select %59, %75, %76 : vector<8x32xi1>, vector<8x32xf32>
    %78 = tpu.iota {dimensions = array<i32: 0>} : vector<16x8xi32>
    %79 = tpu.iota {dimensions = array<i32: 1>} : vector<16x8xi32>
    %c3_i32_24 = arith.constant 3 : i32
    %80 = vector.broadcast %c3_i32_24 : i32 to vector<16x8xi32>
    %81 = arith.shrsi %78, %80 : vector<16x8xi32>
    %c2_i32_25 = arith.constant 2 : i32
    %82 = vector.broadcast %c2_i32_25 : i32 to vector<16x8xi32>
    %83 = arith.shrsi %79, %82 : vector<16x8xi32>
    %84 = arith.cmpi eq, %81, %83 : vector<16x8xi32>
    %cst_26 = arith.constant 1.000000e+00 : f32
    %cst_27 = arith.constant 0.000000e+00 : f32
    %85 = vector.broadcast %cst_26 : f32 to vector<16x8xf32>
    %86 = vector.broadcast %cst_27 : f32 to vector<16x8xf32>
    %87 = arith.select %84, %85, %86 : vector<16x8xi1>, vector<16x8xf32>
    %cst_28 = arith.constant dense<0.000000e+00> : vector<16x32xf32>
    %88 = tpu.matmul %87, %77, %cst_28 {dimension_numbers = #tpu.dot_dimension_numbers<[1], [0], [0], [1], [0, 0, 1, 1], [], []>} : vector<16x8xf32>, vector<8x32xf32>, vector<16x32xf32> -> vector<16x32xf32>
    %cst_29 = arith.constant dense<0.000000e+00> : vector<16x32xf32>
    %89 = tpu.matmul %88, %11, %cst_29 {dimension_numbers = #tpu.dot_dimension_numbers<[1], [0], [0], [1], [0, 0, 1, 1], [], []>} : vector<16x32xf32>, vector<32x32xf32>, vector<16x32xf32> -> vector<16x32xf32>
    %90 = vector.broadcast %7 : vector<1x32xf32> to vector<16x32xf32>
    %91 = arith.addf %89, %90 : vector<16x32xf32>
    %92 = arith.addf %0, %91 : vector<16x32xf32>
    %cst_30 = arith.constant dense<0.000000e+00> : vector<16xf32>
    %93 = vector.multi_reduction <add>, %92, %cst_30 [1] : vector<16x32xf32> to vector<16xf32>
    %94 = vector.shape_cast %93 : vector<16xf32> to vector<16x1xf32>
    %cst_31 = arith.constant 3.200000e+01 : f32
    %95 = vector.broadcast %cst_31 : f32 to vector<16x1xf32>
    %96 = arith.divf %94, %95 : vector<16x1xf32>
    %97 = vector.broadcast %96 : vector<16x1xf32> to vector<16x32xf32>
    %98 = arith.subf %92, %97 : vector<16x32xf32>
    %99 = arith.mulf %98, %98 : vector<16x32xf32>
    %cst_32 = arith.constant dense<0.000000e+00> : vector<16xf32>
    %100 = vector.multi_reduction <add>, %99, %cst_32 [1] : vector<16x32xf32> to vector<16xf32>
    %101 = vector.shape_cast %100 : vector<16xf32> to vector<16x1xf32>
    %cst_33 = arith.constant 3.200000e+01 : f32
    %102 = vector.broadcast %cst_33 : f32 to vector<16x1xf32>
    %103 = arith.divf %101, %102 : vector<16x1xf32>
    %104 = vector.broadcast %96 : vector<16x1xf32> to vector<16x32xf32>
    %105 = arith.subf %92, %104 : vector<16x32xf32>
    %cst_34 = arith.constant 9.99999974E-6 : f32
    %106 = vector.broadcast %cst_34 : f32 to vector<16x1xf32>
    %107 = arith.addf %103, %106 : vector<16x1xf32>
    %108 = math.rsqrt %107 : vector<16x1xf32>
    %109 = vector.broadcast %108 : vector<16x1xf32> to vector<16x32xf32>
    %110 = arith.mulf %105, %109 : vector<16x32xf32>
    %111 = vector.broadcast %5 : vector<1x32xf32> to vector<16x32xf32>
    %112 = arith.mulf %110, %111 : vector<16x32xf32>
    %113 = vector.broadcast %6 : vector<1x32xf32> to vector<16x32xf32>
    %114 = arith.addf %112, %113 : vector<16x32xf32>
    %cst_35 = arith.constant dense<0.000000e+00> : vector<16x8xf32>
    %115 = tpu.matmul %114, %12, %cst_35 {dimension_numbers = #tpu.dot_dimension_numbers<[1], [0], [0], [1], [0, 0, 1, 1], [], []>} : vector<16x32xf32>, vector<32x8xf32>, vector<16x8xf32> -> vector<16x8xf32>
    %116 = vector.broadcast %8 : vector<1x8xf32> to vector<16x8xf32>
    %117 = arith.addf %115, %116 : vector<16x8xf32>
    %cst_36 = arith.constant 5.000000e-01 : f32
    %118 = vector.broadcast %cst_36 : f32 to vector<16x8xf32>
    %119 = arith.mulf %118, %117 : vector<16x8xf32>
    %cst_37 = arith.constant 2.000000e+00 : f32
    %120 = math.sqrt %cst_37 : f32
    %121 = vector.broadcast %120 : f32 to vector<16x8xf32>
    %122 = arith.divf %117, %121 : vector<16x8xf32>
    %123 = math.erf %122 : vector<16x8xf32>
    %cst_38 = arith.constant 1.000000e+00 : f32
    %124 = vector.broadcast %cst_38 : f32 to vector<16x8xf32>
    %125 = arith.addf %124, %123 : vector<16x8xf32>
    %126 = arith.mulf %119, %125 : vector<16x8xf32>
    %cst_39 = arith.constant dense<0.000000e+00> : vector<16x32xf32>
    %127 = tpu.matmul %126, %2, %cst_39 {dimension_numbers = #tpu.dot_dimension_numbers<[1], [0], [0], [1], [0, 0, 1, 1], [], []>} : vector<16x8xf32>, vector<8x32xf32>, vector<16x32xf32> -> vector<16x32xf32>
    %128 = vector.broadcast %9 : vector<1x32xf32> to vector<16x32xf32>
    %129 = arith.addf %127, %128 : vector<16x32xf32>
    %130 = arith.addf %92, %129 : vector<16x32xf32>
    %c0_40 = arith.constant 0 : index
    %c0_41 = arith.constant 0 : index
    %131 = vector.load %arg5[%c0_40, %c0_41] : memref<16x32xf32, #tpu.memory_space<vmem>>, vector<16x32xf32>
    tpu.vector_store %arg5[%c0_40, %c0_41], %130 {strides = array<i32>} : memref<16x32xf32, #tpu.memory_space<vmem>>, vector<16x32xf32>,
    return
  }
  func.func @transform_0(%arg0: i32) -> (i32, i32) {
    %c0_i32 = arith.constant 0 : i32
    %c0_i32_0 = arith.constant 0 : i32
    %c0_i32_1 = arith.constant 0 : i32
    return %c0_i32, %c0_i32_0 : i32, i32
  }
  func.func @transform_1(%arg0: i32) -> (i32, i32) {
    %c0_i32 = arith.constant 0 : i32
    %c0_i32_0 = arith.constant 0 : i32
    %c0_i32_1 = arith.constant 0 : i32
    return %c0_i32, %c0_i32_0 : i32, i32
  }
  func.func @transform_2(%arg0: i32) -> (i32, i32) {
    %c0_i32 = arith.constant 0 : i32
    %c0_i32_0 = arith.constant 0 : i32
    %c0_i32_1 = arith.constant 0 : i32
    return %c0_i32, %c0_i32_0 : i32, i32
  }
  func.func @transform_3(%arg0: i32) -> (i32, i32) {
    %c0_i32 = arith.constant 0 : i32
    %c0_i32_0 = arith.constant 0 : i32
    %c0_i32_1 = arith.constant 0 : i32
    return %c0_i32, %c0_i32_0 : i32, i32
  }
  func.func @transform_4(%arg0: i32) -> (i32, i32) {
    %c0_i32 = arith.constant 0 : i32
    %c0_i32_0 = arith.constant 0 : i32
    %c0_i32_1 = arith.constant 0 : i32
    return %c0_i32, %c0_i32_0 : i32, i32
  }
}

</mosaic_0001>

<bundles_post_ra>
// kernel: tpu_custom_call.1
= control target key start
LH: loop header
LB: loop body
LE: loop exit
PB: predicated region body
PF: predicated region fallthrough
CT: control target
= control target key end

     0   :  { %9 = vsyncpa [#allocation3], 0  ;;  %s1322_s0 = inlined_call_operand.hbm [shape: f32[16,32], index: 0, kind: input, shape index: {}]   ;;  %s1323_s1 = inlined_call_operand.hbm [shape: f32[32,96], index: 1, kind: input, shape index: {}]   ;;  %s1324_s2 = inlined_call_operand.hbm [shape: f32[32,40], index: 2, kind: input, shape index: {}]   ;;  %s1325_s3 = inlined_call_operand.hbm [shape: f32[16,32], index: 3, kind: input, shape index: {}]   ;;  %s1326_s4 = inlined_call_operand.hbm [shape: f32[16,32], index: 4, kind: output, shape index: {}]  }
   0x1   :  { %10 = vsyncpa [#allocation6], 0 }
   0x2   :  { %11 = vsyncpa [#allocation9], 0 }
   0x3   :  { %12 = vsyncpa [#allocation4], 0  ;;  %s1151_s15 = smov [#allocation5]   ;;  %s1152_s17 = smov [#allocation2]  }
   0x4   :  { %s30_s16 = sshll.u32 %s1151_s15, 4  ;;  %s18_s18 = sshll.u32 %s1152_s17, 4  ;;  %s31_s16 = int_to_ptr.vmem [resolvable:$true] %s30_s16  ;;  %s19_s18 = int_to_ptr.vmem [resolvable:$true] %s18_s18 }
   0x5   :  { %s1051_s19 = scalar_lea.vmem %s31_s16, 512  ;;  %p1056_p1 = scmp.lt.s32.totalorder %s31_s16, %s31_s16 }
   0x6   :  { %p1052_p0 = scmp.ne.s32.totalorder %s31_s16, %s1051_s19  ;;  %p1057_p2 = scmp.lt.s32.totalorder %s1051_s19, %s1051_s19 }
   0x8   :  { %p1058_p3 = por %p1057_p2, %p1056_p1 }
   0xa   :  { %p1059_p4 = pnand %p1058_p3, %p1052_p0 }
   0xc   :  { %1062 = shalt.err (!%p1059_p4)
}
   0xd   :  { %s1153_s20 = smov 128   ;;  %s1154_s21 = smov 8  }
   0xe   :  { %36 = dma.hbm_to_vmem [thread:$0]  %s1323_s1, 512, %s31_s16, [#allocation6], %s1153_s20, %s1153_s20, %s1154_s21  }
   0xf   :  { %s1071_s24 = scalar_lea.vmem %s19_s18, 256  ;;  %p1076_p6 = scmp.lt.s32.totalorder %s19_s18, %s19_s18 }
  0x10   :  { %p1072_p5 = scmp.ne.s32.totalorder %s19_s18, %s1071_s24  ;;  %p1077_p7 = scmp.lt.s32.totalorder %s1071_s24, %s1071_s24 }
  0x12   :  { %p1078_p8 = por %p1077_p7, %p1076_p6 }
  0x14   :  { %p1079_p9 = pnand %p1078_p8, %p1072_p5 }
  0x16   :  { %1082 = shalt.err (!%p1079_p9)
}
  0x17   :  { %24 = dma.hbm_to_vmem [thread:$0]  %s1322_s0, 256, %s19_s18, [#allocation3], %s1153_s20, %s1153_s20, %s1154_s21  }
  0x18   :  { %s1155_s27 = smov [#allocation7]   ;;  %s1156_s29 = smov [#allocation8]  }
  0x19   :  { %s42_s28 = sshll.u32 %s1155_s27, 4  ;;  %s54_s30 = sshll.u32 %s1156_s29, 4  ;;  %s43_s28 = int_to_ptr.vmem [resolvable:$true] %s42_s28  ;;  %s55_s30 = int_to_ptr.vmem [resolvable:$true] %s54_s30 }
  0x1a   :  { %s1091_s1 = scalar_lea.vmem %s43_s28, 512  ;;  %p1096_p11 = scmp.lt.s32.totalorder %s43_s28, %s43_s28 }
  0x1b   :  { %p1092_p10 = scmp.ne.s32.totalorder %s43_s28, %s1091_s1  ;;  %p1097_p12 = scmp.lt.s32.totalorder %s1091_s1, %s1091_s1 }
  0x1d   :  { %p1098_p13 = por %p1097_p12, %p1096_p11 }
  0x1f   :  { %p1099_p0 = pnand %p1098_p13, %p1092_p10 }
  0x21   :  { %1102 = shalt.err (!%p1099_p0)
}
  0x22   :  { %48 = dma.hbm_to_vmem [thread:$0]  %s1324_s2, 512, %s43_s28, [#allocation6], %s1153_s20, %s1153_s20, %s1154_s21  }
  0x23   :  { %s1111_s0 = scalar_lea.vmem %s55_s30, 256  ;;  %p1116_p2 = scmp.lt.s32.totalorder %s55_s30, %s55_s30 }
  0x24   :  { %p1112_p1 = scmp.ne.s32.totalorder %s55_s30, %s1111_s0  ;;  %p1117_p3 = scmp.lt.s32.totalorder %s1111_s0, %s1111_s0 }
  0x26   :  { %p1118_p4 = por %p1117_p3, %p1116_p2 }
  0x28   :  { %p1119_p5 = pnand %p1118_p4, %p1112_p1 }
  0x2a   :  { %1122 = shalt.err (!%p1119_p5)
}
  0x2b   :  { %60 = dma.hbm_to_vmem [thread:$0]  %s1325_s3, 256, %s55_s30, [#allocation9], %s1153_s20, %s1153_s20, %s1154_s21  }
  0x2c   :  { %1143 = dma.done.wait [#allocation3], 256  }
  0x2d   :  { %1144 = vsyncadd [#allocation3], 4294967040 }
  0x2e   :  { %1145 = dma.done.wait [#allocation6], 1024  }
  0x2f   :  { %1146 = vsyncadd [#allocation6], 4294966272 }
  0x30   :  { %1147 = dma.done.wait [#allocation9], 256  }
  0x31   :  { %1148 = vsyncadd [#allocation9], 4294967040  ;;  %vm81_vm0 = vcmask 261120   ;;  %v1211_v0 = vld [vmem:[#allocation2] sm:$0xff]  ;;  %v1213_v1 = vld [vmem:[#allocation2 + $0x8] sm:$0xff]  ;;  %v109_v23 = vlaneseq  ;;  %v1157_v39 = vmov 0.0  }
  0x32   :  { %v82_v2 = vsel %vm81_vm0, %v1211_v0, 0.0  ;;  %v85_v3 = vsel %vm81_vm0, %v1213_v1, 0.0  ;;  %v124_v14 = vld [vmem:[#allocation5 + $0x18] sm:$0xff]  ;;  %v123_v15 = vld [vmem:[#allocation5 + $0x10] sm:$0xff]  ;;  %v122_v16 = vld [vmem:[#allocation5 + $0x8] sm:$0xff]  ;;  %963 = vmatprep.subr.mxu1 %v1157_v39  ;;  %vm1158_vm1 = vmmov 0  }
  0x33   :  { %83 = vadd.xlane.f32.xlu0 %v82_v2  ;;  %952 = vmatprep.subr.mxu0 %v124_v14  ;;  %v121_v17 = vld [vmem:[#allocation5] sm:$0xff]  ;;  %v1223_v25 = vshrl.u32 %v109_v23, 7  ;;  %v1226_v27 = vld [vmem:[#allocation8 + $0x8] sm:$0xff]  ;;  %v1240_v41 = vand.u32 127, %v109_v23  ;;  %s1159_s2 = smov 96   ;;  %vm215_vm3 = vcmask 130048  }
  0x34   :  { %953 = vmatpush3.msra.mxu0 %v124_v14  ;;  %967 = vmatprep.mubr.msk.f32.mxu1 %vm1158_vm1, %v1157_v39  ;;  %s1160_s3 = smov 64   ;;  %vm476_vm7 = vcmask 64512   ;;  %s1161_s9 = smov [#allocation10]  }
  0x35   :  { %954 = vmatprep.subr.mxu0 %v123_v15  ;;  %v111_v26 = vsub.s32 0, %v1223_v25  ;;  %v117_v28 = vsub.s32 1, %v1223_v25  ;;  %v210_v40 = vshra.s32 %v1223_v25, 2  ;;  %v211_v48 = vshra.s32 %v1240_v41, 3  ;;  %s889_s10 = sshll.u32 %s1161_s9, 4  ;;  %s890_s10 = int_to_ptr.vmem [resolvable:$true] %s889_s10 }
  0x36   :  { %955 = vmatpush3.msra.mxu0 %v123_v15  ;;  %v289_v49 = vand.u32 3, %v1223_v25  ;;  %v673_v50 = vsub.s32 2, %v1223_v25  ;;  %s1123_s11 = scalar_lea.vmem %s890_s10, 256  ;;  %p1128_p7 = scmp.lt.s32.totalorder %s890_s10, %s890_s10 }
  0x37   :  { %86 = vadd.xlane.f32.xlu0 %v85_v3  ;;  %956 = vmatprep.subr.mxu0 %v122_v16  ;;  %v112_v29 = vrot.slane %v1226_v27, %v111_v26  ;;  %v118_v32 = vrot.slane %v1226_v27, %v117_v28  ;;  %v212_v42 = vmul.u32 8, %v210_v40  ;;  %vm375_vm5 = vcmp.eq.s32.totalorder %v210_v40, %v211_v48  ;;  %p1124_p6 = scmp.ne.s32.totalorder %s890_s10, %s1123_s11  ;;  %p1129_p8 = scmp.lt.s32.totalorder %s1123_s11, %s1123_s11 }
  0x38   :  { %957 = vmatpush3.msra.mxu0 %v122_v16  ;;  %vm1256_vm4 = vcmp.eq.s32.totalorder %v211_v48, %v289_v49  ;;  %v78_v16 = vld [vmem:[#allocation7 + $0x8] sm:$0xff] }
  0x39   :  { %958 = vmatprep.subr.mxu0 %v121_v17  ;;  %vm213_vm2 = vcmp.eq.s32.totalorder %v1240_v41, %v212_v42  ;;  %p1130_p9 = por %p1129_p8, %p1128_p7 }
  0x3a   :  { %959 = vmatpush3.msra.mxu0 %v121_v17  ;;  %v214_v44 = vsel %vm213_vm2, 1.0, %v1157_v39  ;;  %v77_v17 = vld [vmem:[#allocation7] sm:$0xff] }
  0x3b   :  { %977 = vmatprep.subr.mxu0 %v1157_v39  ;;  %p1131_p10 = pnand %p1130_p9, %p1124_p6 }
  0xbc   :  { %v84_v4 = vpop.xlane.xlu0 %83 }
  0xbd   :  { %v89_v5 = vmul.f32 0.03125, %v84_v4 }
  0xbf   :  { %v91_v6 = vsub.f32 %v1211_v0, %v89_v5 }
  0xc0   :  { %v87_v7 = vpop.xlane.xlu0 %86 }
  0xc1   :  { %v90_v8 = vmul.f32 0.03125, %v87_v7  ;;  %v93_v9 = vmul.f32 %v91_v6, %v91_v6  ;;  %v471_v7 = vshra.s32 %v1240_v41, 2 }
  0xc3   :  { %v92_v10 = vsub.f32 %v1213_v1, %v90_v8  ;;  %v95_v11 = vsel %vm81_vm0, %v93_v9, 0.0  ;;  %v80_v9 = vld [vmem:[#allocation7 + $0x18] sm:$0xff] }
  0xc4   :  { %96 = vadd.xlane.f32.xlu1 %v95_v11  ;;  %v468_v11 = vadd.s32 8, %v1223_v25 }
  0xc5   :  { %v94_v12 = vmul.f32 %v92_v10, %v92_v10 }
  0xc7   :  { %v98_v13 = vsel %vm81_vm0, %v94_v12, 0.0  ;;  %v470_v12 = vshra.s32 %v468_v11, 3 }
  0xc8   :  { %99 = vadd.xlane.f32.xlu1 %v98_v13 }
  0xc9   :  { %vm473_vm8 = vcmp.eq.s32.totalorder %v470_v12, %v471_v7 }
  0xca   :  { %v475_v14 = vsel %vm473_vm8, 1.0, %v1157_v39 }
 0x14d   :  { %v97_v18 = vpop.xlane.xlu1 %96 }
 0x14e   :  { %v101_v19 = vmul.f32 0.03125, %v97_v18 }
 0x150   :  { %v103_v20 = vadd.f32 1e-05, %v101_v19 }
 0x151   :  { %v100_v21 = vpop.xlane.xlu1 %99 }
 0x152   :  { %1027 = vrsqrt.f32 %v103_v20  ;;  %v102_v22 = vmul.f32 0.03125, %v100_v21  ;;  %v560_v20 = vsub.s32 4, %v1223_v25 }
 0x154   :  { %v104_v24 = vadd.f32 1e-05, %v102_v22  ;;  %v561_v21 = vrot.slane %v1226_v27, %v560_v20 }
 0x156   :  { %1029 = vrsqrt.f32 %v104_v24 }
 0x15f   :  { %v1028_v30 = vpop.eup %1027 }
 0x160   :  { %v107_v31 = vmul.f32 %v1028_v30, %v91_v6  ;;  %v469_v6 = vshra.s32 %v1223_v25, 3 }
 0x162   :  { %v113_v33 = vmul.f32 %v112_v29, %v107_v31  ;;  %vm472_vm6 = vcmp.eq.s32.totalorder %v469_v6, %v471_v7 }
 0x163   :  { %v1030_v34 = vpop.eup %1029  ;;  %v474_v8 = vsel %vm472_vm6, 1.0, %v1157_v39 }
 0x164   :  { %v108_v35 = vmul.f32 %v1030_v34, %v92_v10  ;;  %v119_v36 = vadd.f32 %v118_v32, %v113_v33  ;;  %v79_v10 = vld [vmem:[#allocation7 + $0x10] sm:$0xff] }
 0x166   :  { %v114_v37 = vmul.f32 %v112_v29, %v108_v35  ;;  %960 = vmatprep.mubr.msk.f32.mxu0 %vm81_vm0, %v119_v36 }
 0x168   :  { %v120_v38 = vadd.f32 %v118_v32, %v114_v37 }
 0x16a   :  { %961 = vmatmul.mubr.msk.f32.vlgmr.msra.gmra.mxu0 %vm81_vm0, %v120_v38 }
 0x16b   :  { %981 = vmatprep.mubr.msk.f32.mxu0 %vm1158_vm1, %v1157_v39 }
 0x22a   :  { %v962_v43 = vpop.f32.mrf.mxu0 }
 0x22b   :  { %296 = vrot.lane.b32.xlu0 %v962_v43, %s1159_s2  ;;  %964 = vmatpush3.msra.mxu1 %v962_v43 }
 0x22c   :  { %v197_v45 = vpop.f32.mrf.mxu0  ;;  %965 = vmatprep.subr.mxu1 %v1157_v39 }
 0x22d   :  { %294 = vrot.lane.b32.xlu1 %v197_v45, %s1159_s2  ;;  %966 = vmatpush3.msra.mxu1 %v197_v45 }
 0x22e   :  { %968 = vmatmul.mubr.msk.f32.vlgmr.msra.gmra.mxu1 %vm215_vm3, %v214_v44  ;;  %970 = vmatprep.subr.mxu1 %v1157_v39 }
 0x22f   :  { %974 = vmatprep.mubr.msk.f32.mxu1 %vm1158_vm1, %v1157_v39 }
 0x29d   :  { %v297_v46 = vpop.permute.xlu0 %296 }
 0x29e   :  { %971 = vmatpush3.xpose.msk.msra.mxu1 %vm81_vm0, %v297_v46 }
 0x29f   :  { %972 = vmatprep.subr.mxu1 %v1157_v39  ;;  %v295_v47 = vpop.permute.xlu1 %294 }
 0x2a2   :  { %973 = vmatpush3.xpose.msk.msra.mxu1 %vm81_vm0, %v295_v47 }
 0x2a3   :  { %989 = vmatprep.subr.mxu1 %v80_v9 }
 0x2ee   :  { %v285_v51 = vpop.f32.mrf.mxu1 }
 0x2ef   :  { %v291_v52 = vsel %vm1256_vm4, %v285_v51, 0.0 }
 0x2f0   :  { %v969_v53 = vpop.f32.mrf.mxu1  ;;  %975 = vmatmul.mubr.msk.f32.vlgmr.msra.gmra.mxu1 %vm81_vm0, %v291_v52  ;;  %v674_v52 = vrot.slane %v1226_v27, %v673_v50 }
 0x2f1   :  { %990 = vmatpush3.msra.mxu1 %v80_v9  ;;  %v679_v53 = vsub.s32 3, %v1223_v25 }
 0x2f2   :  { %991 = vmatprep.subr.mxu1 %v79_v10 }
 0x2f3   :  { %992 = vmatpush3.msra.mxu1 %v79_v10 }
 0x2f4   :  { %993 = vmatprep.subr.mxu1 %v78_v16 }
 0x2f5   :  { %994 = vmatpush3.msra.mxu1 %v78_v16 }
 0x2f6   :  { %995 = vmatprep.subr.mxu1 %v77_v17 }
 0x2f7   :  { %996 = vmatpush3.msra.mxu1 %v77_v17 }
 0x3b0   :  { %v371_v54 = vpop.f32.mrf.mxu1 }
 0x3b1   :  { %v376_v55 = vsel %vm375_vm5, %v371_v54, -1e+30 }
 0x3b2   :  { %v976_v56 = vpop.f32.mrf.mxu1  ;;  %v377_v57 = vsel %vm215_vm3, %v376_v55, -inf }
 0x3b3   :  { %378 = vmax.xlane.f32.xlu1 %v377_v57 }
 0x3c4   :  { %388 = vrot.lane.b32.xlu1 %v197_v45, %s1160_s3 }
 0x43c   :  { %v379_v58 = vpop.xlane.xlu1 %378 }
 0x43d   :  { %v380_v59 = vsub.f32 %v376_v55, %v379_v58  ;;  %v680_v58 = vrot.slane %v1226_v27, %v679_v53 }
 0x43f   :  { %v381_v60 = vmul.f32 1.442695, %v380_v59 }
 0x440   :  { %v389_v3 = vpop.permute.xlu1 %388 }
 0x441   :  { %1031 = vpow2.f32 %v381_v60 }
 0x44e   :  { %v1032_v61 = vpop.eup %1031 }
 0x44f   :  { %v383_v62 = vsel %vm215_vm3, %v1032_v61, 0.0 }
 0x450   :  { %384 = vadd.xlane.f32.xlu0 %v383_v62  ;;  %v75_v62 = vld [vmem:[#allocation8] sm:$0xff] }
 0x451   :  { %1011 = vmatprep.subr.mxu1 %v75_v62 }
 0x466   :  { %390 = vrot.lane.b32.xlu0 %v962_v43, %s1160_s3 }
 0x4d9   :  { %v385_v63 = vpop.xlane.xlu0 %384 }
 0x4da   :  { %1033 = vrcp.f32 %v385_v63  ;;  %v685_v63 = vsub.s32 5, %v1223_v25 }
 0x4dd   :  { %v391_v2 = vpop.permute.xlu0 %390 }
 0x4de   :  { %978 = vmatpush3.msra.mxu0 %v391_v2  ;;  %v686_v2 = vrot.slane %v1226_v27, %v685_v63 }
 0x4df   :  { %979 = vmatprep.subr.mxu0 %v1157_v39 }
 0x4e0   :  { %980 = vmatpush3.msra.mxu0 %v389_v3 }
 0x4e7   :  { %v1034_v4 = vpop.eup %1033 }
 0x4e8   :  { %v387_v5 = vmul.f32 %v1034_v4, %v1032_v61 }
 0x4ea   :  { %982 = vmatmul.mubr.msk.f32.vlgmr.msra.gmra.mxu0 %vm215_vm3, %v387_v5 }
 0x4eb   :  { %986 = vmatprep.mubr.msk.f32.mxu0 %vm476_vm7, %v474_v8 }
 0x5aa   :  { %v463_v13 = vpop.f32.mrf.mxu0 }
 0x5ab   :  { %984 = vmatprep.subr.msk.mxu0 %vm1256_vm4, %v463_v13 }
 0x5ac   :  { %v983_v15 = vpop.f32.mrf.mxu0  ;;  %985 = vmatpush3.msk.msra.mxu0 %vm1256_vm4, %v463_v13 }
 0x5ad   :  { %987 = vmatmul.mubr.msk.f32.vlgmr.msra.gmra.mxu0 %vm476_vm7, %v475_v14 }
 0x66d   :  { %v988_v18 = vpop.f32.mrf.mxu0 }
 0x66f   :  { %v549_v19 = vpop.f32.mrf.mxu0 }
 0x670   :  { %997 = vmatprep.mubr.msk.f32.mxu1 %vm81_vm0, %v549_v19 }
 0x671   :  { %998 = vmatmul.mubr.msk.f32.vlgmr.msra.gmra.mxu1 %vm81_vm0, %v988_v18 }
 0x672   :  { %1012 = vmatpush3.msra.mxu1 %v75_v62 }
 0x731   :  { %v999_v22 = vpop.f32.mrf.mxu1 }
 0x732   :  { %v640_v23 = vadd.f32 %v999_v22, %v561_v21 }
 0x733   :  { %v634_v24 = vpop.f32.mrf.mxu1 }
 0x734   :  { %v1283_v26 = vadd.f32 %v640_v23, %v1213_v1  ;;  %v635_v28 = vadd.f32 %v634_v24, %v561_v21 }
 0x736   :  { %v1286_v29 = vadd.f32 %v635_v28, %v1211_v0  ;;  %v648_v30 = vsel %vm81_vm0, %v1283_v26, 0.0 }
 0x737   :  { %649 = vadd.xlane.f32.xlu0 %v648_v30 }
 0x738   :  { %v645_v31 = vsel %vm81_vm0, %v1286_v29, 0.0 }
 0x739   :  { %646 = vadd.xlane.f32.xlu1 %v645_v31 }
 0x7c0   :  { %v650_v32 = vpop.xlane.xlu0 %649 }
 0x7c1   :  { %v652_v33 = vmul.f32 0.03125, %v650_v32 }
 0x7c2   :  { %v647_v34 = vpop.xlane.xlu1 %646 }
 0x7c3   :  { %v654_v35 = vsub.f32 %v1283_v26, %v652_v33  ;;  %v651_v36 = vmul.f32 0.03125, %v647_v34 }
 0x7c5   :  { %v653_v1 = vsub.f32 %v1286_v29, %v651_v36  ;;  %v656_v37 = vmul.f32 %v654_v35, %v654_v35 }
 0x7c7   :  { %v660_v0 = vsel %vm81_vm0, %v656_v37, 0.0  ;;  %v655_v38 = vmul.f32 %v653_v1, %v653_v1 }
 0x7c8   :  { %661 = vadd.xlane.f32.xlu1 %v660_v0 }
 0x7c9   :  { %v657_v39 = vsel %vm81_vm0, %v655_v38, 0.0 }
 0x7ca   :  { %658 = vadd.xlane.f32.xlu0 %v657_v39 }
 0x7d9   :  { %695 = vrot.lane.b32.xlu1 %v79_v10, %s1159_s2 }
 0x7dd   :  { %693 = vrot.lane.b32.xlu1 %v78_v16, %s1159_s2 }
 0x7e0   :  { %697 = vrot.lane.b32.xlu0 %v80_v9, %s1159_s2 }
 0x7e1   :  { %691 = vrot.lane.b32.xlu1 %v77_v17, %s1159_s2  ;;  %v797_v17 = vsub.s32 6, %v1223_v25 }
 0x7e3   :  { %v798_v18 = vrot.slane %v1226_v27, %v797_v17 }
 0x851   :  { %v662_v40 = vpop.xlane.xlu1 %661 }
 0x852   :  { %v664_v41 = vmul.f32 0.03125, %v662_v40 }
 0x853   :  { %v659_v42 = vpop.xlane.xlu0 %658 }
 0x854   :  { %v666_v43 = vadd.f32 1e-05, %v664_v41  ;;  %v663_v44 = vmul.f32 0.03125, %v659_v42 }
 0x855   :  { %v696_v45 = vpop.permute.xlu1 %695 }
 0x856   :  { %1035 = vrsqrt.f32 %v666_v43  ;;  %v665_v46 = vadd.f32 1e-05, %v663_v44 }
 0x857   :  { %v698_v47 = vpop.permute.xlu0 %697 }
 0x858   :  { %1037 = vrsqrt.f32 %v665_v46  ;;  %1000 = vmatprep.subr.mxu0 %v698_v47 }
 0x859   :  { %1001 = vmatpush3.msra.mxu0 %v698_v47  ;;  %v694_v48 = vpop.permute.xlu1 %693 }
 0x85a   :  { %1002 = vmatprep.subr.mxu0 %v696_v45 }
 0x85b   :  { %1003 = vmatpush3.msra.mxu0 %v696_v45 }
 0x85c   :  { %1004 = vmatprep.subr.mxu0 %v694_v48 }
 0x85d   :  { %1005 = vmatpush3.msra.mxu0 %v694_v48  ;;  %v692_v49 = vpop.permute.xlu1 %691 }
 0x85e   :  { %1006 = vmatprep.subr.mxu0 %v692_v49 }
 0x85f   :  { %1007 = vmatpush3.msra.mxu0 %v692_v49 }
 0x863   :  { %v1036_v51 = vpop.eup %1035 }
 0x864   :  { %v670_v54 = vmul.f32 %v1036_v51, %v654_v35 }
 0x865   :  { %v1038_v55 = vpop.eup %1037 }
 0x866   :  { %v669_v56 = vmul.f32 %v1038_v55, %v653_v1  ;;  %v676_v57 = vmul.f32 %v674_v52, %v670_v54 }
 0x868   :  { %v675_v59 = vmul.f32 %v674_v52, %v669_v56  ;;  %v682_v61 = vadd.f32 %v680_v58, %v676_v57 }
 0x86a   :  { %v681_v60 = vadd.f32 %v680_v58, %v675_v59 }
 0x86c   :  { %1008 = vmatprep.mubr.msk.f32.mxu0 %vm81_vm0, %v681_v60 }
 0x86d   :  { %1009 = vmatmul.mubr.msk.f32.vlgmr.msra.gmra.mxu0 %vm81_vm0, %v682_v61 }
 0x92d   :  { %v1010_v3 = vpop.f32.mrf.mxu0 }
 0x92e   :  { %v781_v4 = vadd.f32 %v1010_v3, %v686_v2 }
 0x92f   :  { %v775_v5 = vpop.f32.mrf.mxu0 }
 0x930   :  { %v788_v6 = vmul.f32 0.70710677, %v781_v4  ;;  %v776_v7 = vadd.f32 %v775_v5, %v686_v2  ;;  %v785_v14 = vmul.f32 0.5, %v781_v4 }
 0x932   :  { %1039 = verf.f32 %v788_v6  ;;  %v787_v8 = vmul.f32 0.70710677, %v776_v7  ;;  %v784_v12 = vmul.f32 0.5, %v776_v7 }
 0x934   :  { %1041 = verf.f32 %v787_v8 }
 0x93f   :  { %v1040_v9 = vpop.eup %1039 }
 0x940   :  { %v792_v11 = vadd.f32 1.0, %v1040_v9 }
 0x941   :  { %v1042_v10 = vpop.eup %1041 }
 0x942   :  { %v791_v13 = vadd.f32 1.0, %v1042_v10  ;;  %v794_v16 = vmul.f32 %v792_v11, %v785_v14 }
 0x944   :  { %v793_v15 = vmul.f32 %v791_v13, %v784_v12 }
 0x946   :  { %1013 = vmatprep.mubr.msk.f32.mxu1 %vm476_vm7, %v793_v15 }
 0x947   :  { %1014 = vmatmul.mubr.msk.f32.vlgmr.msra.gmra.mxu1 %vm476_vm7, %v794_v16 }
 0xa07   :  { %v1015_v19 = vpop.f32.mrf.mxu1 }
 0xa08   :  { %v877_v20 = vadd.f32 %v1015_v19, %v798_v18 }
 0xa09   :  { %v871_v21 = vpop.f32.mrf.mxu1 }
 0xa0a   :  { %v881_v22 = vadd.f32 %v877_v20, %v1283_v26  ;;  %v872_v23 = vadd.f32 %v871_v21, %v798_v18 }
 0xa0c   :  { %883 = vst.msk [vmem:[#allocation10 + $0x8] sm:$0xff] %vm81_vm0, %v881_v22  ;;  %v880_v24 = vadd.f32 %v872_v23, %v1286_v29 }
 0xa0e   :  { %882 = vst.msk [vmem:[#allocation10] sm:$0xff] %vm81_vm0, %v880_v24 }
 0xa0f   :  { %1134 = shalt.err (!%p1131_p10)
}
 0xa10   :  { %895 = dma.vmem_to_hbm [thread:$0]  %s890_s10, 256, %s1326_s4, [#allocation4], %s1153_s20, %s1153_s20, %s1154_s21  }
 0xa11   :  { %1149 = dma.done.wait [#allocation4], 256  }
 0xa12   :  { %1150 = vsyncadd [#allocation4], 4294967040 }
 0xa13   :  { %899 = vsyncpa [#allocation3], 1 }
 0xa14   :  { %900 = vsyncpa [#allocation6], 1 }
 0xa15   :  { %901 = vsyncpa [#allocation9], 1 }
 0xa16   :  { %902 = vsyncpa [#allocation4], 1 }

</bundles_post_ra>
